<compile_context>
chip_gen: v7x
topology: tpu7x:2x2x1
jax: 0.10.0
libtpu: 0.0.40
codegen_flags: <defaults>
</compile_context>

<pallas_src>
import functools

import jax
import jax.numpy as jnp
from jax.experimental import pallas as pl
from jax.experimental.pallas import tpu as pltpu


def _i32(v):
    """Two's-complement wrap of a 32-bit literal into an int32 constant."""
    v &= 0xFFFFFFFF
    if v >= 1 << 31:
        v -= 1 << 32
    return jnp.int32(v)


def _salt_and_pepper_kernel(seed_ref, x_ref, o_ref, *, hw, tile_hw,
                            thr_pepper, thr_salt):
    b = pl.program_id(0)
    t = pl.program_id(1)

    # Global pixel index for every lane of this tile: one draw per pixel,
    # shared across the C channels (broadcast along the sublane/C axis below).
    lane = jax.lax.broadcasted_iota(jnp.int32, (1, 1, tile_hw), 2)
    pixel = b * hw + t * tile_hw + lane

    # Counter-based hash (lowbias32 mixer) of (pixel index, seed), computed in
    # wrapping int32 with logical shifts so it lowers on Mosaic and in
    # interpret mode alike.
    v = pixel + seed_ref[0] * _i32(0x9E3779B9)
    v = (v ^ jax.lax.shift_right_logical(v, 16)) * _i32(0x7FEB352D)
    v = (v ^ jax.lax.shift_right_logical(v, 15)) * _i32(0x846CA68B)
    v = v ^ jax.lax.shift_right_logical(v, 16)
    # 31 uniform random bits per pixel -> compare against integer thresholds.
    bits = v & jnp.int32(0x7FFFFFFF)

    x = x_ref[...]
    # v5e has no bf16 VPU path; do the select in f32 and narrow once on store.
    compute_dtype = jnp.float32 if x.dtype == jnp.bfloat16 else x.dtype
    xc = x.astype(compute_dtype)
    neg_one = jnp.asarray(-1.0, dtype=compute_dtype)
    pos_one = jnp.asarray(1.0, dtype=compute_dtype)

    # bits < thr_pepper            -> pepper (-1)
    # thr_pepper <= bits < thr_salt -> salt  (+1)
    # otherwise                     -> keep
    out = jnp.where(bits < jnp.int32(thr_pepper), neg_one,
                    jnp.where(bits < jnp.int32(thr_salt), pos_one, xc))
    o_ref[...] = out.astype(o_ref.dtype)


def _pick_tile_hw(hw):
    """Largest divisor of hw that is a multiple of 128 and <= 2048."""
    if hw % 128 != 0:
        return hw  # single full-extent block along the pixel axis
    for cand in (2048, 1024, 512, 256, 128):
        if hw % cand == 0:
            return cand
    return 128


@functools.partial(jax.jit, static_argnames=("ratio",))
def salt_and_pepper_apply(x, seed, *, ratio):
    """Apply salt-and-pepper noise to an NCHW image tensor."""
    B, C, H, W = x.shape
    hw = H * W
    tile_hw = _pick_tile_hw(hw)
    num_tiles = hw // tile_hw

    # (B, C, H, W) -> (B, C, H*W): contiguous reshape, no data movement.
    x3 = x.reshape(B, C, hw)
    seed_arr = jnp.reshape(jnp.asarray(seed, dtype=jnp.int32), (1,))

    # Integer thresholds on 31 random bits.
    thr_pepper = min(int(round(ratio * float(1 << 31))), (1 << 31) - 1)
    thr_salt = min(int(round(2.0 * ratio * float(1 << 31))), (1 << 31) - 1)

    kernel = functools.partial(
        _salt_and_pepper_kernel, hw=hw, tile_hw=tile_hw,
        thr_pepper=thr_pepper, thr_salt=thr_salt)

    out3 = pl.pallas_call(
        kernel,
        out_shape=jax.ShapeDtypeStruct((B, C, hw), x.dtype),
        grid_spec=pltpu.PrefetchScalarGridSpec(
            num_scalar_prefetch=1,
            grid=(B, num_tiles),
            in_specs=[
                pl.BlockSpec((1, C, tile_hw), lambda b, t, seed_ref: (b, 0, t)),
            ],
            out_specs=pl.BlockSpec(
                (1, C, tile_hw), lambda b, t, seed_ref: (b, 0, t)),
        ),
        compiler_params=pltpu.CompilerParams(
            dimension_semantics=("parallel", "parallel")),
        # Logically in-place: alias the image input (operand 1; operand 0 is
        # the prefetched seed) to the output.
        input_output_aliases={1: 0},
    )(seed_arr, x3)

    return out3.reshape(B, C, H, W)


class SaltAndPepper:
    """JAX/Pallas equivalent of the PyTorch Salt_and_Pepper module."""

    def __init__(self, ratio):
        self.ratio = float(ratio)

    def __call__(self, noise_and_cover, seed=0):
        noise_and_cover = list(noise_and_cover)
        noise_and_cover[0] = salt_and_pepper_apply(
            noise_and_cover[0], seed, ratio=self.ratio)
        return noise_and_cover


if __name__ == "__main__":
    key = jax.random.PRNGKey(0)
    k_img, k_cov = jax.random.split(key)

    B, C, H, W = 2, 4, 16, 16
    encoded_image = jax.random.normal(k_img, (B, C, H, W), dtype=jnp.float32)
    cover_image = jax.random.normal(k_cov, (B, C, H, W), dtype=jnp.float32)

    layer = SaltAndPepper(ratio=0.1)
    out = layer([encoded_image, cover_image], seed=1234)

    noised = jax.block_until_ready(out[0])
    assert noised.shape == (B, C, H, W)
    assert noised.dtype == encoded_image.dtype

    # every output pixel is either -1, +1, or the original value
    same = noised == encoded_image
    is_pepper = noised == -1.0
    is_salt = noised == 1.0
    assert bool(jnp.all(same | is_pepper | is_salt))

    # mask is shared across channels: where a pixel was perturbed, it was
    # perturbed identically in all channels
    changed = ~same
    assert bool(jnp.all(changed == changed[:, :1, :, :]))

    # roughly 2*ratio of the pixels should be perturbed (very loose bound)
    frac = float(jnp.mean(changed[:, 0].astype(jnp.float32)))
    assert 0.02 < frac < 0.5, frac

    # cover image passed through untouched
    assert bool(jnp.all(out[1] == cover_image))

    print("KERNEL_OK")
</pallas_src>

<mosaic_0001>
module attributes {stable_mosaic.version = 11 : i64} {
  func.func @_salt_and_pepper_kernel(%arg0: i32, %arg1: i32, %arg2: memref<1xi32, #tpu.memory_space<smem>>, %arg3: memref<1x4x256xf32, #tpu.memory_space<vmem>>, %arg4: memref<1x4x256xf32, #tpu.memory_space<vmem>>) attributes {dimension_semantics = [#tpu.dimension_semantics<parallel>, #tpu.dimension_semantics<parallel>], iteration_bounds = array<i64: 2, 1>, scalar_prefetch = 1 : i64, scratch_operands = 0 : i64, tpu.core_type = #tpu.core_type<tc>, window_params = [{transform_indices = @transform_0, window_bounds = array<i64: 1, 4, 256>}, {transform_indices = @transform_1, window_bounds = array<i64: 1, 4, 256>}]} {
    %0 = tpu.iota {dimensions = array<i32: 2>} : vector<1x1x256xi32>
    %c256_i32 = arith.constant 256 : i32
    %1 = arith.muli %arg0, %c256_i32 : i32
    %c256_i32_0 = arith.constant 256 : i32
    %2 = arith.muli %arg1, %c256_i32_0 : i32
    %3 = arith.addi %1, %2 : i32
    %4 = vector.broadcast %3 : i32 to vector<1x1x256xi32>
    %5 = arith.addi %4, %0 : vector<1x1x256xi32>
    %c0 = arith.constant 0 : index
    %6 = memref.load %arg2[%c0] : memref<1xi32, #tpu.memory_space<smem>>
    %c-1640531527_i32 = arith.constant -1640531527 : i32
    %7 = arith.muli %6, %c-1640531527_i32 : i32
    %8 = vector.broadcast %7 : i32 to vector<1x1x256xi32>
    %9 = arith.addi %5, %8 : vector<1x1x256xi32>
    %c16_i32 = arith.constant 16 : i32
    %10 = vector.broadcast %c16_i32 : i32 to vector<1x1x256xi32>
    %11 = arith.shrui %9, %10 : vector<1x1x256xi32>
    %12 = arith.xori %9, %11 : vector<1x1x256xi32>
    %c2146121005_i32 = arith.constant 2146121005 : i32
    %13 = vector.broadcast %c2146121005_i32 : i32 to vector<1x1x256xi32>
    %14 = arith.muli %12, %13 : vector<1x1x256xi32>
    %c15_i32 = arith.constant 15 : i32
    %15 = vector.broadcast %c15_i32 : i32 to vector<1x1x256xi32>
    %16 = arith.shrui %14, %15 : vector<1x1x256xi32>
    %17 = arith.xori %14, %16 : vector<1x1x256xi32>
    %c-2073254261_i32 = arith.constant -2073254261 : i32
    %18 = vector.broadcast %c-2073254261_i32 : i32 to vector<1x1x256xi32>
    %19 = arith.muli %17, %18 : vector<1x1x256xi32>
    %c16_i32_1 = arith.constant 16 : i32
    %20 = vector.broadcast %c16_i32_1 : i32 to vector<1x1x256xi32>
    %21 = arith.shrui %19, %20 : vector<1x1x256xi32>
    %22 = arith.xori %19, %21 : vector<1x1x256xi32>
    %c2147483647_i32 = arith.constant 2147483647 : i32
    %23 = vector.broadcast %c2147483647_i32 : i32 to vector<1x1x256xi32>
    %24 = arith.andi %22, %23 : vector<1x1x256xi32>
    %c0_2 = arith.constant 0 : index
    %c0_3 = arith.constant 0 : index
    %c0_4 = arith.constant 0 : index
    %25 = vector.load %arg3[%c0_2, %c0_3, %c0_4] : memref<1x4x256xf32, #tpu.memory_space<vmem>>, vector<1x4x256xf32>
    %c214748365_i32 = arith.constant 214748365 : i32
    %26 = vector.broadcast %c214748365_i32 : i32 to vector<1x1x256xi32>
    %27 = arith.cmpi slt, %24, %26 : vector<1x1x256xi32>
    %c429496730_i32 = arith.constant 429496730 : i32
    %28 = vector.broadcast %c429496730_i32 : i32 to vector<1x1x256xi32>
    %29 = arith.cmpi slt, %24, %28 : vector<1x1x256xi32>
    %cst = arith.constant 1.000000e+00 : f32
    %30 = vector.shape_cast %29 : vector<1x1x256xi1> to vector<1x1x256xi1>
    %31 = vector.broadcast %30 : vector<1x1x256xi1> to vector<1x4x256xi1>
    %32 = vector.broadcast %cst : f32 to vector<1x4x256xf32>
    %33 = arith.select %31, %32, %25 : vector<1x4x256xi1>, vector<1x4x256xf32>
    %cst_5 = arith.constant -1.000000e+00 : f32
    %34 = vector.shape_cast %27 : vector<1x1x256xi1> to vector<1x1x256xi1>
    %35 = vector.broadcast %34 : vector<1x1x256xi1> to vector<1x4x256xi1>
    %36 = vector.broadcast %cst_5 : f32 to vector<1x4x256xf32>
    %37 = arith.select %35, %36, %33 : vector<1x4x256xi1>, vector<1x4x256xf32>
    %c0_6 = arith.constant 0 : index
    %c0_7 = arith.constant 0 : index
    %c0_8 = arith.constant 0 : index
    %38 = vector.load %arg4[%c0_6, %c0_7, %c0_8] : memref<1x4x256xf32, #tpu.memory_space<vmem>>, vector<1x4x256xf32>
    tpu.vector_store %arg4[%c0_6, %c0_7, %c0_8], %37 {strides = array<i32>} : memref<1x4x256xf32, #tpu.memory_space<vmem>>, vector<1x4x256xf32>,
    return
  }
  func.func @transform_0(%arg0: i32, %arg1: i32, %arg2: memref<1xi32, #tpu.memory_space<smem>>) -> (i32, i32, i32) {
    %c0_i32 = arith.constant 0 : i32
    %c0_i32_0 = arith.constant 0 : i32
    return %arg0, %c0_i32, %arg1 : i32, i32, i32
  }
  func.func @transform_1(%arg0: i32, %arg1: i32, %arg2: memref<1xi32, #tpu.memory_space<smem>>) -> (i32, i32, i32) {
    %c0_i32 = arith.constant 0 : i32
    %c0_i32_0 = arith.constant 0 : i32
    return %arg0, %c0_i32, %arg1 : i32, i32, i32
  }
}

</mosaic_0001>

<bundles_post_ra>
// kernel: salt_and_pepper_apply.1
= control target key start
LH: loop header
LB: loop body
LE: loop exit
PB: predicated region body
PF: predicated region fallthrough
CT: control target
= control target key end

     0   :  { %s383_s11 = smov 0   ;;  %s385_s12 = smov 0   ;;  %s416_s0 = inlined_call_operand.<no memory space> [shape: s32[1], index: 0, kind: input, shape index: {}]   ;;  %s417_s1 = inlined_call_operand.vmem [shape: f32[2,4,256], index: 1, kind: input, shape index: {}, may-alias: {1,2}]   ;;  %s418_s2 = inlined_call_operand.vmem [shape: f32[2,4,256], index: 2, kind: output, shape index: {}, may-alias: {1,2}]  }
   0x1   :  { %7 = sst [smem:[#allocation3]] %s416_s0  ;;  %s387_s13 = smov 0  }
   0x2 LB: > { %s25_s0 = sadd.s32 1, %s359_s12  ;;  %p306_p0 = scmp.ge.s32.totalorder %s363_s13, 1  ;;  %s363_s13 = sphi %s387_s13, %s13_s13   ;;  %s359_s12 = sphi %s385_s12, %s420_s12   ;;  %s355_s11 = sphi %s383_s11, %s419_s11  }
   0x3   : > { %p27_p1 = scmp.ge.s32.totalorder %s25_s0, 2  ;;  %p110_p2 = scmp.lt.s32.totalorder %s363_s13, 3 }
   0x5   : > { %s422_s0 = smov (%p27_p1, %s25_s0), 0  ;;  %p111_p3 = pnand %p306_p0, %p110_p2 }
   0x6   : > { %v158_v0 = vlaneseq (!%p111_p3)  ;;  %s311_s14 = sshll.u32 (!%p111_p3), %s355_s11, 8  ;;  %s167_s15 = sld [smem:[#allocation3]] (!%p111_p3) }
   0x7   : > { %114 = sbr.rel (%p111_p3) target bundleno = 42 (0x2a), region = 24  ;;  %v164_v2 = vstv (!%p111_p3), %s311_s14  ;;  %p139_p4 = scmp.lt.s32.totalorder (!%p111_p3), %s355_s11, 1 }
   0x8   : > { %v159_v1 = vand.u32 (!%p111_p3), 127, %v158_v0 }
   0xa   : > { %v160_v3 = vadd.s32 (!%p111_p3), 128, %v159_v1  ;;  %v165_v4 = vadd.s32 (!%p111_p3), %v164_v2, %v159_v1 }
   0xc   : > { %v166_v5 = vadd.s32 (!%p111_p3), %v164_v2, %v160_v3  ;;  %s168_s16 = smul.u32 (!%p111_p3), 2654435769, %s167_s15 }
   0xe   : > { %v169_v6 = vstv %s168_s16  ;;  %s424_s11 = smov (!%p139_p4, %s355_s11), 1 }
   0xf   : > { %v170_v7 = vadd.s32 %v169_v6, %v165_v4  ;;  %v171_v8 = vadd.s32 %v169_v6, %v166_v5  ;;  %s314_s17 = sshll.u32 %s424_s11, 3 }
  0x10   : > { %s146_s20 = scalar_lea.vmem %s417_s1, %s314_s17  ;;  %s156_s23 = scalar_lea.vmem %s418_s2, %s314_s17 }
  0x11   : > { %v172_v9 = vshrl.u32 %v170_v7, 16  ;;  %v173_v10 = vshrl.u32 %v171_v8, 16  ;;  %v190_v23 = vld [vmem:[%s146_s20] sm:$0xff] }
  0x12   : > { %v200_v28 = vcombine.high %v190_v23, %v190_v23 }
  0x13   : > { %v174_v11 = vxor.u32 %v172_v9, %v170_v7  ;;  %v175_v12 = vxor.u32 %v173_v10, %v171_v8 }
  0x15   : > { %v176_v13 = vmul.u32 2146121005, %v174_v11  ;;  %v177_v14 = vmul.u32 2146121005, %v175_v12 }
  0x17   : > { %v178_v15 = vshrl.u32 %v176_v13, 15  ;;  %v179_v16 = vshrl.u32 %v177_v14, 15 }
  0x19   : > { %v180_v17 = vxor.u32 %v178_v15, %v176_v13  ;;  %v181_v18 = vxor.u32 %v179_v16, %v177_v14 }
  0x1b   : > { %v182_v19 = vmul.u32 2221713035, %v180_v17  ;;  %v183_v20 = vmul.u32 2221713035, %v181_v18 }
  0x1d   : > { %v184_v21 = vshrl.u32 %v182_v19, 16  ;;  %v185_v22 = vshrl.u32 %v183_v20, 16 }
  0x1f   : > { %v186_v24 = vxor.u32 %v184_v21, %v182_v19  ;;  %v187_v25 = vxor.u32 %v185_v22, %v183_v20 }
  0x21   : > { %v188_v26 = vand.u32 2147483647, %v186_v24  ;;  %v189_v27 = vand.u32 2147483647, %v187_v25 }
  0x23   : > { %vm191_vm0 = vcmp.lt.s32.totalorder %v188_v26, 214748365  ;;  %vm192_vm1 = vcmp.lt.s32.totalorder %v189_v27, 214748365  ;;  %vm193_vm2 = vcmp.lt.s32.totalorder %v188_v26, 429496730 }
  0x24   : > { %vm194_vm3 = vcmp.lt.s32.totalorder %v189_v27, 429496730  ;;  %v202_v29 = vsel %vm193_vm2, 1.0, %v190_v23 }
  0x25   : > { %v203_v30 = vsel %vm194_vm3, 1.0, %v200_v28  ;;  %v208_v31 = vsel %vm191_vm0, -1.0, %v202_v29 }
  0x26   : > { %v209_v32 = vsel %vm192_vm1, -1.0, %v203_v30 }
  0x27   : > { %v212_v33 = vcombine.low %v208_v31, %v209_v32 }
  0x29   : > { %214 = vst [vmem:[%s156_s23] sm:$0xff] %v212_v33 }
  0x2a PF: > { %s13_s13 = sadd.s32 1, %s363_s13   ;;  %s419_s11 = smov %s359_s12 }
  0x2b   : > { %p10_p5 = scmp.ge.s32.totalorder %s13_s13, 4   ;;  %s420_s12 = smov %s422_s0 }
  0x2d   :  { %12 = sbr.rel (!%p10_p5) target bundleno = 2 (0x2), region = 54 }

</bundles_post_ra>
